<compile_context>
chip_gen: v6e
topology: v6e:2x2x1
jax: 0.10.0
libtpu: 0.0.40
codegen_flags: <defaults>
</compile_context>

<pallas_src>
import math

import jax
import jax.numpy as jnp
from jax.experimental import pallas as pl
from jax.experimental.pallas import tpu as pltpu


# ---------------------------------------------------------------------------
# Kernel 1: embedding gather
#   ids are a scalar-prefetch operand (SMEM).  TILE rows per grid step.
# ---------------------------------------------------------------------------
_GATHER_TILE = 32
_VMEM_TABLE_BYTES = 4 * 1024 * 1024     # keep table resident below this size


def _gather_resident_kernel(ids_ref, table_ref, out_ref):
    """Whole table resident in VMEM; dynamic-row reads per id."""
    tile = out_ref.shape[0]
    base = pl.program_id(0) * tile
    for i in range(tile):                                   # static unroll
        row = ids_ref[base + i]
        out_ref[pl.ds(i, 1), :] = table_ref[pl.ds(row, 1), :]


def _gather_dma_kernel(ids_ref, table_hbm, out_ref, rows, sems):
    """Large-vocab fallback: table stays in HBM; TILE row DMAs in flight."""
    tile = out_ref.shape[0]
    base = pl.program_id(0) * tile
    for i in range(tile):                                   # issue all DMAs
        pltpu.make_async_copy(table_hbm.at[ids_ref[base + i]],
                              rows.at[i], sems.at[i]).start()
    for i in range(tile):                                   # then wait
        pltpu.make_async_copy(table_hbm.at[ids_ref[base + i]],
                              rows.at[i], sems.at[i]).wait()
    out_ref[...] = rows[...]                                # one full-tile store


def embedding_gather(ids_flat, table):
    """ids_flat: (N,) int32 in [0, vocab); table: (vocab, D). Returns (N, D)."""
    n = ids_flat.shape[0]
    vocab, d = table.shape
    tile = _GATHER_TILE
    n_pad = ((n + tile - 1) // tile) * tile
    if n_pad != n:
        ids_flat = jnp.pad(ids_flat, (0, n_pad - n))        # pad with id 0

    bytes_accessed = 2 * n_pad * d * table.dtype.itemsize + n_pad * 4
    cost = pl.CostEstimate(flops=0, transcendentals=0,
                           bytes_accessed=bytes_accessed)
    cparams = pltpu.CompilerParams(dimension_semantics=("parallel",))

    if vocab * d * table.dtype.itemsize <= _VMEM_TABLE_BYTES:
        out = pl.pallas_call(
            _gather_resident_kernel,
            out_shape=jax.ShapeDtypeStruct((n_pad, d), table.dtype),
            grid_spec=pltpu.PrefetchScalarGridSpec(
                num_scalar_prefetch=1,                       # ids -> SMEM
                grid=(n_pad // tile,),
                in_specs=[
                    # constant block index -> table DMA'd into VMEM once.
                    pl.BlockSpec((vocab, d), lambda t, ids: (0, 0)),
                ],
                out_specs=pl.BlockSpec((tile, d), lambda t, ids: (t, 0)),
            ),
            compiler_params=cparams,
            cost_estimate=cost,
        )(ids_flat, table)
    else:
        out = pl.pallas_call(
            _gather_dma_kernel,
            out_shape=jax.ShapeDtypeStruct((n_pad, d), table.dtype),
            grid_spec=pltpu.PrefetchScalarGridSpec(
                num_scalar_prefetch=1,
                grid=(n_pad // tile,),
                in_specs=[pl.BlockSpec(memory_space=pl.ANY)],  # table in HBM
                out_specs=pl.BlockSpec((tile, d), lambda t, ids: (t, 0)),
                scratch_shapes=[pltpu.VMEM((tile, d), table.dtype),
                                pltpu.SemaphoreType.DMA((tile,))],
            ),
            compiler_params=cparams,
            cost_estimate=cost,
        )(ids_flat, table)
    return out[:n]


# ---------------------------------------------------------------------------
# Kernel 2: chunk-mean summaries + (pos_enc + level) additive bias
#   mean over a chunk is a VPU/XLU sublane reduction (no averaging matmul).
# ---------------------------------------------------------------------------
def _summary_kernel(x_ref, bias_ref, out_ref):
    x = x_ref[0]                                             # (S, D)
    c = out_ref.shape[1]
    cs = x.shape[0] // c
    parts = [jnp.sum(x[i * cs:(i + 1) * cs, :], axis=0, keepdims=True)
             for i in range(c)]                              # c x (1, D)
    summ = jnp.concatenate(parts, axis=0) * (1.0 / cs)       # (C, D)
    out_ref[0] = (summ + bias_ref[...]).astype(out_ref.dtype)


def summary_fourier(token_emb, bias_cd):
    b, s, d = token_emb.shape
    c = bias_cd.shape[0]
    return pl.pallas_call(
        _summary_kernel,
        out_shape=jax.ShapeDtypeStruct((b, c, d), token_emb.dtype),
        grid_spec=pltpu.PrefetchScalarGridSpec(
            num_scalar_prefetch=0,
            grid=(b,),
            in_specs=[
                pl.BlockSpec((1, s, d), lambda i: (i, 0, 0)),
                pl.BlockSpec((c, d), lambda i: (0, 0)),
            ],
            out_specs=pl.BlockSpec((1, c, d), lambda i: (i, 0, 0)),
        ),
        compiler_params=pltpu.CompilerParams(dimension_semantics=("parallel",)),
        cost_estimate=pl.CostEstimate(
            flops=b * s * d + 2 * b * c * d, transcendentals=0,
            bytes_accessed=4 * (b * s * d + c * d + b * c * d)),
    )(token_emb, bias_cd)


# ---------------------------------------------------------------------------
# Kernel 3: fused stack of HierarchicalMultiHeadLatentAttention layers
#   grid = (batch_tiles, num_layers); h lives in VMEM scratch across layers.
# ---------------------------------------------------------------------------
def _make_mhla_stack_kernel(num_layers, m_tile, c, d, num_heads):
    hd = d // num_heads
    bt = m_tile // c
    scale = 1.0 / math.sqrt(d)

    def kernel(h0_ref, wqkv_ref, wd_ref, wup_ref, wo_ref, decay_ref,
               out_ref, h_scr):
        layer = pl.program_id(1)

        @pl.when(layer == 0)
        def _():
            h_scr[...] = h0_ref[...].astype(jnp.float32)     # (M, D)

        x = h_scr[...]                                       # (M, D) f32
        # q | (k+v) projection as one wide matmul; wk+wv pre-combined on host.
        proj = jnp.dot(x, wqkv_ref[0], preferred_element_type=jnp.float32)
        q = proj[:, :d]
        kv = proj[:, d:]
        latent = jnp.dot(kv, wd_ref[0], preferred_element_type=jnp.float32)
        up = jnp.dot(latent, wup_ref[0], preferred_element_type=jnp.float32)
        k_rec = up[:, :d]
        v_rec = up[:, d:]
        decay = decay_ref[...]                               # (C, C)

        attn_rows = []
        for b0 in range(bt):                                 # static unroll
            r0 = b0 * c
            head_outs = []
            for h in range(num_heads):                       # static unroll
                lo = h * hd
                qh = q[r0:r0 + c, lo:lo + hd]                # (C, hd)
                kh = k_rec[r0:r0 + c, lo:lo + hd]
                vh = v_rec[r0:r0 + c, lo:lo + hd]
                s = jax.lax.dot_general(
                    qh, kh, (((1,), (1,)), ((), ())),
                    preferred_element_type=jnp.float32) * scale   # (C, C)
                s = s * decay                                # time decay
                s = s - jnp.max(s, axis=-1, keepdims=True)
                e = jnp.exp(s)
                w = e * pl.reciprocal(jnp.sum(e, axis=-1, keepdims=True),
                                      approx=True)           # softmax (EUP)
                head_outs.append(jnp.dot(w, vh,
                                         preferred_element_type=jnp.float32))
            attn_rows.append(jnp.concatenate(head_outs, axis=-1))   # (C, D)
        attn = (jnp.concatenate(attn_rows, axis=0)
                if bt > 1 else attn_rows[0])                 # (M, D)
        # single wide W_o matmul on the concatenated heads.
        new_h = jnp.dot(attn, wo_ref[0], preferred_element_type=jnp.float32)
        h_scr[...] = new_h

        @pl.when(layer == num_layers - 1)
        def _():
            out_ref[...] = new_h.astype(out_ref.dtype)

    return kernel


def mhla_stack_forward(h0_2d, stacked, decay, num_heads, batch, chunks):
    m_total, d = h0_2d.shape
    num_layers = stacked["wqkv"].shape[0]
    dl = stacked["wd"].shape[2]
    c = chunks

    # batch tile: fold as many batch rows as possible into the matmul M dim
    # (<= 256 rows), keeping (8,128)-friendly block shapes.
    bt = batch
    for cand in range(batch, 0, -1):
        if batch % cand:
            continue
        mt = cand * c
        if mt <= 256 and (mt % 8 == 0 or cand == batch):
            bt = cand
            break
    m_tile = bt * c
    grid = (batch // bt, num_layers)

    kernel = _make_mhla_stack_kernel(num_layers, m_tile, c, d, num_heads)

    flops_layer = (2 * m_total * d * (2 * d) + 2 * m_total * d * dl
                   + 2 * m_total * dl * (2 * d) + 2 * m_total * d * d
                   + num_heads * batch * 4 * c * c * (d // num_heads))
    trans = num_layers * batch * num_heads * c * (c + 1)
    byts = 4 * (num_layers * (d * 2 * d + d * dl + dl * 2 * d + d * d)
                + 2 * m_total * d + c * c)

    return pl.pallas_call(
        kernel,
        out_shape=jax.ShapeDtypeStruct((m_total, d), h0_2d.dtype),
        grid_spec=pltpu.PrefetchScalarGridSpec(
            num_scalar_prefetch=0,
            grid=grid,
            in_specs=[
                pl.BlockSpec((m_tile, d), lambda i, l: (i, 0)),
                pl.BlockSpec((1, d, 2 * d), lambda i, l: (l, 0, 0)),
                pl.BlockSpec((1, d, dl), lambda i, l: (l, 0, 0)),
                pl.BlockSpec((1, dl, 2 * d), lambda i, l: (l, 0, 0)),
                pl.BlockSpec((1, d, d), lambda i, l: (l, 0, 0)),
                pl.BlockSpec((c, c), lambda i, l: (0, 0)),
            ],
            out_specs=pl.BlockSpec((m_tile, d), lambda i, l: (i, 0)),
            scratch_shapes=[pltpu.VMEM((m_tile, d), jnp.float32)],
        ),
        compiler_params=pltpu.CompilerParams(
            dimension_semantics=("parallel", "arbitrary")),
        cost_estimate=pl.CostEstimate(
            flops=num_layers * flops_layer, transcendentals=trans,
            bytes_accessed=byts),
    )(h0_2d, stacked["wqkv"], stacked["wd"], stacked["wup"], stacked["wo"],
      decay)


# ---------------------------------------------------------------------------
# Kernel 4: fc_out (x @ W + b), tiled over (M, vocab)
# ---------------------------------------------------------------------------
def _linear_bias_kernel(x_ref, w_ref, b_ref, out_ref):
    out_ref[...] = (jnp.dot(x_ref[...], w_ref[...],
                            preferred_element_type=jnp.float32)
                    + b_ref[...]).astype(out_ref.dtype)


def _pick_tile(extent, candidates):
    for t in candidates:
        if extent % t == 0:
            return t
    return extent


def linear_bias(x2d, w, b_row):
    m, d = x2d.shape
    v = w.shape[1]
    tm = m if m <= 128 else _pick_tile(m, (128, 64, 32, 16, 8))
    tn = v if v <= 1024 else _pick_tile(v, (1024, 512, 256, 128))
    grid = (m // tm, v // tn)
    return pl.pallas_call(
        _linear_bias_kernel,
        out_shape=jax.ShapeDtypeStruct((m, v), x2d.dtype),
        grid_spec=pltpu.PrefetchScalarGridSpec(
            num_scalar_prefetch=0,
            grid=grid,
            in_specs=[
                pl.BlockSpec((tm, d), lambda i, j: (i, 0)),
                pl.BlockSpec((d, tn), lambda i, j: (0, j)),
                pl.BlockSpec((1, tn), lambda i, j: (0, j)),
            ],
            out_specs=pl.BlockSpec((tm, tn), lambda i, j: (i, j)),
        ),
        compiler_params=pltpu.CompilerParams(
            dimension_semantics=("parallel", "parallel")),
        cost_estimate=pl.CostEstimate(
            flops=2 * m * d * v, transcendentals=0,
            bytes_accessed=4 * (m * d + d * v + v + m * v)),
    )(x2d, w, b_row)


# ---------------------------------------------------------------------------
# Parameters + orchestration
# ---------------------------------------------------------------------------
class HierarchicalTransformerParams:
    def __init__(self, vocab_size, embedding_dim, num_layers, num_heads,
                 seq_length, hierarchy_levels=3, chunk_size=32,
                 max_length=384, lambda_decay=0.01, key=None):
        if key is None:
            key = jax.random.PRNGKey(0)
        if embedding_dim % num_heads != 0:
            raise ValueError("embedding_dim must be divisible by num_heads")

        self.vocab_size = vocab_size
        self.embedding_dim = embedding_dim
        self.num_layers = num_layers
        self.num_heads = num_heads
        self.seq_length = seq_length
        self.hierarchy_levels = hierarchy_levels
        self.chunk_size = chunk_size
        self.lambda_decay = lambda_decay
        self.d_latent = embedding_dim // 2

        keys = jax.random.split(key, 3 + num_layers)
        self.embedding = jax.random.normal(
            keys[0], (vocab_size, embedding_dim), jnp.float32)
        self.summary_embeddings = jax.random.normal(
            keys[1], (hierarchy_levels, embedding_dim), jnp.float32)

        # Fourier positional encoding buffer (as in FourierSummaryEmbedding).
        position = jnp.arange(max_length, dtype=jnp.float32)[:, None]
        div_term = jnp.exp(jnp.arange(0, embedding_dim, 2, dtype=jnp.float32)
                           * (-math.log(10000.0) / embedding_dim))
        pe = jnp.zeros((max_length, embedding_dim), jnp.float32)
        pe = pe.at[:, 0::2].set(jnp.sin(position * div_term))
        pe = pe.at[:, 1::2].set(jnp.cos(position * div_term))
        self.pos_enc = pe

        def lin(k, fan_in, fan_out):
            bound = 1.0 / math.sqrt(fan_in)
            return jax.random.uniform(k, (fan_in, fan_out), jnp.float32,
                                      -bound, bound)

        self.layers = []
        for li in range(num_layers):
            lk = jax.random.split(keys[3 + li], 7)
            self.layers.append(dict(
                wq=lin(lk[0], embedding_dim, embedding_dim),
                wk=lin(lk[1], embedding_dim, embedding_dim),
                wv=lin(lk[2], embedding_dim, embedding_dim),
                wd=lin(lk[3], embedding_dim, self.d_latent),
                wuk=lin(lk[4], self.d_latent, embedding_dim),
                wuv=lin(lk[5], self.d_latent, embedding_dim),
                wo=lin(lk[6], embedding_dim, embedding_dim),
            ))

        # Stacked / fused weights for the single MHLA pallas_call:
        #   wqkv = [wq | wk+wv]  (k,v only ever appear as (k+v) @ wd)
        #   wup  = [wuk | wuv]
        self.stacked = dict(
            wqkv=jnp.stack([jnp.concatenate([L["wq"], L["wk"] + L["wv"]],
                                            axis=1) for L in self.layers]),
            wd=jnp.stack([L["wd"] for L in self.layers]),
            wup=jnp.stack([jnp.concatenate([L["wuk"], L["wuv"]], axis=1)
                           for L in self.layers]),
            wo=jnp.stack([L["wo"] for L in self.layers]),
        )

        fk = jax.random.split(keys[2], 2)
        self.fc_w = lin(fk[0], embedding_dim, vocab_size)
        bb = 1.0 / math.sqrt(embedding_dim)
        self.fc_b = jax.random.uniform(fk[1], (vocab_size,), jnp.float32,
                                       -bb, bb)

    def forward(self, src, level=0):
        return hierarchical_transformer_forward(self, src, level=level)


def hierarchical_transformer_forward(params, src, level=0):
    b, s = src.shape
    d = params.embedding_dim
    cs = params.chunk_size
    assert s % cs == 0, "seq_len must be divisible by chunk_size"
    c = s // cs

    # 1) token embeddings (Pallas gather).
    ids = jnp.clip(src.reshape(-1), 0, params.vocab_size - 1).astype(jnp.int32)
    tok = embedding_gather(ids, params.embedding).reshape(b, s, d)

    # 2) chunk-mean summaries + (Fourier + level) bias (Pallas).
    bias = params.pos_enc[:c, :] + params.summary_embeddings[level][None, :]
    h = summary_fourier(tok, bias)                           # (B, C, D)

    # 3) fused MHLA layer stack (one Pallas call for all layers).
    t = jnp.arange(c, dtype=jnp.float32)
    decay = jnp.exp(-params.lambda_decay * jnp.abs(t[:, None] - t[None, :]))
    h2d = h.reshape(b * c, d)
    h2d = mhla_stack_forward(h2d, params.stacked, decay, params.num_heads,
                             b, c)

    # 4) fc_out (Pallas, tiled).
    logits = linear_bias(h2d, params.fc_w, params.fc_b[None, :])
    return logits.reshape(b, c, params.vocab_size)


# ---------------------------------------------------------------------------
# Pure-JAX reference (for validation)
# ---------------------------------------------------------------------------
def reference_forward(params, src, level=0):
    hp = jax.lax.Precision.HIGHEST
    b, s = src.shape
    d = params.embedding_dim
    cs = params.chunk_size
    c = s // cs
    hd = d // params.num_heads

    ids = jnp.clip(src, 0, params.vocab_size - 1)
    tok = params.embedding[ids]                              # (B, S, D)
    summ = tok.reshape(b, c, cs, d).mean(axis=2)             # (B, C, D)
    h = summ + params.pos_enc[:c, :] + params.summary_embeddings[level]

    t = jnp.arange(c, dtype=jnp.float32)
    decay = jnp.exp(-params.lambda_decay * jnp.abs(t[:, None] - t[None, :]))

    for layer in params.layers:
        q = jnp.matmul(h, layer["wq"], precision=hp)
        k = jnp.matmul(h, layer["wk"], precision=hp)
        v = jnp.matmul(h, layer["wv"], precision=hp)
        latent = jnp.matmul(k + v, layer["wd"], precision=hp)
        k_rec = jnp.matmul(latent, layer["wuk"], precision=hp)
        v_rec = jnp.matmul(latent, layer["wuv"], precision=hp)

        def split(x):
            return x.reshape(b, c, params.num_heads, hd).transpose(0, 2, 1, 3)

        qh, kh, vh = split(q), split(k_rec), split(v_rec)
        scores = jnp.einsum("bhid,bhjd->bhij", qh, kh,
                            precision=hp) / math.sqrt(d)
        scores = scores * decay
        w = jax.nn.softmax(scores, axis=-1)
        o = jnp.einsum("bhij,bhjd->bhid", w, vh, precision=hp)
        o = o.transpose(0, 2, 1, 3).reshape(b, c, d)
        h = jnp.matmul(o, layer["wo"], precision=hp)

    return jnp.matmul(h, params.fc_w, precision=hp) + params.fc_b


if __name__ == "__main__":
    key = jax.random.PRNGKey(0)
    k_params, k_ids = jax.random.split(key)

    vocab_size = 256
    embedding_dim = 128          # multiple of 128 -> lane-dense stores
    num_layers = 2
    num_heads = 4
    batch, seq_len = 2, 32
    chunk_size = 8
    level = 0

    params = HierarchicalTransformerParams(
        vocab_size, embedding_dim, num_layers, num_heads, seq_len,
        hierarchy_levels=3, chunk_size=chunk_size, key=k_params)

    src = jax.random.randint(k_ids, (batch, seq_len), 0, vocab_size,
                             dtype=jnp.int32)

    out = params.forward(src, level=level)
    out = jax.block_until_ready(out)

    ref = reference_forward(params, src, level=level)
    assert out.shape == (batch, seq_len // chunk_size, vocab_size)
    max_err = float(jnp.max(jnp.abs(out - ref)))
    assert jnp.allclose(out, ref, atol=5e-3, rtol=5e-3), f"max_err={max_err}"

    print("KERNEL_OK")
</pallas_src>

<mosaic_0001>
module attributes {stable_mosaic.version = 11 : i64} {
  func.func @_gather_resident_kernel(%arg0: i32, %arg1: memref<64xi32, #tpu.memory_space<smem>>, %arg2: memref<256x128xf32, #tpu.memory_space<vmem>>, %arg3: memref<32x128xf32, #tpu.memory_space<vmem>>) attributes {dimension_semantics = [#tpu.dimension_semantics<parallel>], iteration_bounds = array<i64: 2>, scalar_prefetch = 1 : i64, scratch_operands = 0 : i64, tpu.core_type = #tpu.core_type<tc>, window_params = [{pipeline_mode = #tpu.pipeline_mode<synchronous>, transform_indices = @transform_0, window_bounds = array<i64: 256, 128>}, {transform_indices = @transform_1, window_bounds = array<i64: 32, 128>}]} {
    %c32_i32 = arith.constant 32 : i32
    %0 = arith.muli %arg0, %c32_i32 : i32
    %c0_i32 = arith.constant 0 : i32
    %1 = arith.addi %0, %c0_i32 : i32
    %2 = arith.index_cast %1 : i32 to index
    %3 = memref.load %arg1[%2] : memref<64xi32, #tpu.memory_space<smem>>
    %4 = arith.index_cast %3 : i32 to index
    %c0 = arith.constant 0 : index
    %5 = vector.load %arg2[%4, %c0] : memref<256x128xf32, #tpu.memory_space<vmem>>, vector<1x128xf32>
    %c0_0 = arith.constant 0 : index
    %c0_1 = arith.constant 0 : index
    %6 = vector.load %arg3[%c0_0, %c0_1] : memref<32x128xf32, #tpu.memory_space<vmem>>, vector<1x128xf32>
    tpu.vector_store %arg3[%c0_0, %c0_1], %5 {strides = array<i32>} : memref<32x128xf32, #tpu.memory_space<vmem>>, vector<1x128xf32>,
    %c1_i32 = arith.constant 1 : i32
    %7 = arith.addi %0, %c1_i32 : i32
    %8 = arith.index_cast %7 : i32 to index
    %9 = memref.load %arg1[%8] : memref<64xi32, #tpu.memory_space<smem>>
    %10 = arith.index_cast %9 : i32 to index
    %c0_2 = arith.constant 0 : index
    %11 = vector.load %arg2[%10, %c0_2] : memref<256x128xf32, #tpu.memory_space<vmem>>, vector<1x128xf32>
    %c1 = arith.constant 1 : index
    %c0_3 = arith.constant 0 : index
    %12 = vector.load %arg3[%c1, %c0_3] : memref<32x128xf32, #tpu.memory_space<vmem>>, vector<1x128xf32>
    tpu.vector_store %arg3[%c1, %c0_3], %11 {strides = array<i32>} : memref<32x128xf32, #tpu.memory_space<vmem>>, vector<1x128xf32>,
    %c2_i32 = arith.constant 2 : i32
    %13 = arith.addi %0, %c2_i32 : i32
    %14 = arith.index_cast %13 : i32 to index
    %15 = memref.load %arg1[%14] : memref<64xi32, #tpu.memory_space<smem>>
    %16 = arith.index_cast %15 : i32 to index
    %c0_4 = arith.constant 0 : index
    %17 = vector.load %arg2[%16, %c0_4] : memref<256x128xf32, #tpu.memory_space<vmem>>, vector<1x128xf32>
    %c2 = arith.constant 2 : index
    %c0_5 = arith.constant 0 : index
    %18 = vector.load %arg3[%c2, %c0_5] : memref<32x128xf32, #tpu.memory_space<vmem>>, vector<1x128xf32>
    tpu.vector_store %arg3[%c2, %c0_5], %17 {strides = array<i32>} : memref<32x128xf32, #tpu.memory_space<vmem>>, vector<1x128xf32>,
    %c3_i32 = arith.constant 3 : i32
    %19 = arith.addi %0, %c3_i32 : i32
    %20 = arith.index_cast %19 : i32 to index
    %21 = memref.load %arg1[%20] : memref<64xi32, #tpu.memory_space<smem>>
    %22 = arith.index_cast %21 : i32 to index
    %c0_6 = arith.constant 0 : index
    %23 = vector.load %arg2[%22, %c0_6] : memref<256x128xf32, #tpu.memory_space<vmem>>, vector<1x128xf32>
    %c3 = arith.constant 3 : index
    %c0_7 = arith.constant 0 : index
    %24 = vector.load %arg3[%c3, %c0_7] : memref<32x128xf32, #tpu.memory_space<vmem>>, vector<1x128xf32>
    tpu.vector_store %arg3[%c3, %c0_7], %23 {strides = array<i32>} : memref<32x128xf32, #tpu.memory_space<vmem>>, vector<1x128xf32>,
    %c4_i32 = arith.constant 4 : i32
    %25 = arith.addi %0, %c4_i32 : i32
    %26 = arith.index_cast %25 : i32 to index
    %27 = memref.load %arg1[%26] : memref<64xi32, #tpu.memory_space<smem>>
    %28 = arith.index_cast %27 : i32 to index
    %c0_8 = arith.constant 0 : index
    %29 = vector.load %arg2[%28, %c0_8] : memref<256x128xf32, #tpu.memory_space<vmem>>, vector<1x128xf32>
    %c4 = arith.constant 4 : index
    %c0_9 = arith.constant 0 : index
    %30 = vector.load %arg3[%c4, %c0_9] : memref<32x128xf32, #tpu.memory_space<vmem>>, vector<1x128xf32>
    tpu.vector_store %arg3[%c4, %c0_9], %29 {strides = array<i32>} : memref<32x128xf32, #tpu.memory_space<vmem>>, vector<1x128xf32>,
    %c5_i32 = arith.constant 5 : i32
    %31 = arith.addi %0, %c5_i32 : i32
    %32 = arith.index_cast %31 : i32 to index
    %33 = memref.load %arg1[%32] : memref<64xi32, #tpu.memory_space<smem>>
    %34 = arith.index_cast %33 : i32 to index
    %c0_10 = arith.constant 0 : index
    %35 = vector.load %arg2[%34, %c0_10] : memref<256x128xf32, #tpu.memory_space<vmem>>, vector<1x128xf32>
    %c5 = arith.constant 5 : index
    %c0_11 = arith.constant 0 : index
    %36 = vector.load %arg3[%c5, %c0_11] : memref<32x128xf32, #tpu.memory_space<vmem>>, vector<1x128xf32>
    tpu.vector_store %arg3[%c5, %c0_11], %35 {strides = array<i32>} : memref<32x128xf32, #tpu.memory_space<vmem>>, vector<1x128xf32>,
    %c6_i32 = arith.constant 6 : i32
    %37 = arith.addi %0, %c6_i32 : i32
    %38 = arith.index_cast %37 : i32 to index
    %39 = memref.load %arg1[%38] : memref<64xi32, #tpu.memory_space<smem>>
    %40 = arith.index_cast %39 : i32 to index
    %c0_12 = arith.constant 0 : index
    %41 = vector.load %arg2[%40, %c0_12] : memref<256x128xf32, #tpu.memory_space<vmem>>, vector<1x128xf32>
    %c6 = arith.constant 6 : index
    %c0_13 = arith.constant 0 : index
    %42 = vector.load %arg3[%c6, %c0_13] : memref<32x128xf32, #tpu.memory_space<vmem>>, vector<1x128xf32>
    tpu.vector_store %arg3[%c6, %c0_13], %41 {strides = array<i32>} : memref<32x128xf32, #tpu.memory_space<vmem>>, vector<1x128xf32>,
    %c7_i32 = arith.constant 7 : i32
    %43 = arith.addi %0, %c7_i32 : i32
    %44 = arith.index_cast %43 : i32 to index
    %45 = memref.load %arg1[%44] : memref<64xi32, #tpu.memory_space<smem>>
    %46 = arith.index_cast %45 : i32 to index
    %c0_14 = arith.constant 0 : index
    %47 = vector.load %arg2[%46, %c0_14] : memref<256x128xf32, #tpu.memory_space<vmem>>, vector<1x128xf32>
    %c7 = arith.constant 7 : index
    %c0_15 = arith.constant 0 : index
    %48 = vector.load %arg3[%c7, %c0_15] : memref<32x128xf32, #tpu.memory_space<vmem>>, vector<1x128xf32>
    tpu.vector_store %arg3[%c7, %c0_15], %47 {strides = array<i32>} : memref<32x128xf32, #tpu.memory_space<vmem>>, vector<1x128xf32>,
    %c8_i32 = arith.constant 8 : i32
    %49 = arith.addi %0, %c8_i32 : i32
    %50 = arith.index_cast %49 : i32 to index
    %51 = memref.load %arg1[%50] : memref<64xi32, #tpu.memory_space<smem>>
    %52 = arith.index_cast %51 : i32 to index
    %c0_16 = arith.constant 0 : index
    %53 = vector.load %arg2[%52, %c0_16] : memref<256x128xf32, #tpu.memory_space<vmem>>, vector<1x128xf32>
    %c8 = arith.constant 8 : index
    %c0_17 = arith.constant 0 : index
    %54 = vector.load %arg3[%c8, %c0_17] : memref<32x128xf32, #tpu.memory_space<vmem>>, vector<1x128xf32>
    tpu.vector_store %arg3[%c8, %c0_17], %53 {strides = array<i32>} : memref<32x128xf32, #tpu.memory_space<vmem>>, vector<1x128xf32>,
    %c9_i32 = arith.constant 9 : i32
    %55 = arith.addi %0, %c9_i32 : i32
    %56 = arith.index_cast %55 : i32 to index
    %57 = memref.load %arg1[%56] : memref<64xi32, #tpu.memory_space<smem>>
    %58 = arith.index_cast %57 : i32 to index
    %c0_18 = arith.constant 0 : index
    %59 = vector.load %arg2[%58, %c0_18] : memref<256x128xf32, #tpu.memory_space<vmem>>, vector<1x128xf32>
    %c9 = arith.constant 9 : index
    %c0_19 = arith.constant 0 : index
    %60 = vector.load %arg3[%c9, %c0_19] : memref<32x128xf32, #tpu.memory_space<vmem>>, vector<1x128xf32>
    tpu.vector_store %arg3[%c9, %c0_19], %59 {strides = array<i32>} : memref<32x128xf32, #tpu.memory_space<vmem>>, vector<1x128xf32>,
    %c10_i32 = arith.constant 10 : i32
    %61 = arith.addi %0, %c10_i32 : i32
    %62 = arith.index_cast %61 : i32 to index
    %63 = memref.load %arg1[%62] : memref<64xi32, #tpu.memory_space<smem>>
    %64 = arith.index_cast %63 : i32 to index
    %c0_20 = arith.constant 0 : index
    %65 = vector.load %arg2[%64, %c0_20] : memref<256x128xf32, #tpu.memory_space<vmem>>, vector<1x128xf32>
    %c10 = arith.constant 10 : index
    %c0_21 = arith.constant 0 : index
    %66 = vector.load %arg3[%c10, %c0_21] : memref<32x128xf32, #tpu.memory_space<vmem>>, vector<1x128xf32>
    tpu.vector_store %arg3[%c10, %c0_21], %65 {strides = array<i32>} : memref<32x128xf32, #tpu.memory_space<vmem>>, vector<1x128xf32>,
    %c11_i32 = arith.constant 11 : i32
    %67 = arith.addi %0, %c11_i32 : i32
    %68 = arith.index_cast %67 : i32 to index
    %69 = memref.load %arg1[%68] : memref<64xi32, #tpu.memory_space<smem>>
    %70 = arith.index_cast %69 : i32 to index
    %c0_22 = arith.constant 0 : index
    %71 = vector.load %arg2[%70, %c0_22] : memref<256x128xf32, #tpu.memory_space<vmem>>, vector<1x128xf32>
    %c11 = arith.constant 11 : index
    %c0_23 = arith.constant 0 : index
    %72 = vector.load %arg3[%c11, %c0_23] : memref<32x128xf32, #tpu.memory_space<vmem>>, vector<1x128xf32>
    tpu.vector_store %arg3[%c11, %c0_23], %71 {strides = array<i32>} : memref<32x128xf32, #tpu.memory_space<vmem>>, vector<1x128xf32>,
    %c12_i32 = arith.constant 12 : i32
    %73 = arith.addi %0, %c12_i32 : i32
    %74 = arith.index_cast %73 : i32 to index
    %75 = memref.load %arg1[%74] : memref<64xi32, #tpu.memory_space<smem>>
    %76 = arith.index_cast %75 : i32 to index
    %c0_24 = arith.constant 0 : index
    %77 = vector.load %arg2[%76, %c0_24] : memref<256x128xf32, #tpu.memory_space<vmem>>, vector<1x128xf32>
    %c12 = arith.constant 12 : index
    %c0_25 = arith.constant 0 : index
    %78 = vector.load %arg3[%c12, %c0_25] : memref<32x128xf32, #tpu.memory_space<vmem>>, vector<1x128xf32>
    tpu.vector_store %arg3[%c12, %c0_25], %77 {strides = array<i32>} : memref<32x128xf32, #tpu.memory_space<vmem>>, vector<1x128xf32>,
    %c13_i32 = arith.constant 13 : i32
    %79 = arith.addi %0, %c13_i32 : i32
    %80 = arith.index_cast %79 : i32 to index
    %81 = memref.load %arg1[%80] : memref<64xi32, #tpu.memory_space<smem>>
    %82 = arith.index_cast %81 : i32 to index
    %c0_26 = arith.constant 0 : index
    %83 = vector.load %arg2[%82, %c0_26] : memref<256x128xf32, #tpu.memory_space<vmem>>, vector<1x128xf32>
    %c13 = arith.constant 13 : index
    %c0_27 = arith.constant 0 : index
    %84 = vector.load %arg3[%c13, %c0_27] : memref<32x128xf32, #tpu.memory_space<vmem>>, vector<1x128xf32>
    tpu.vector_store %arg3[%c13, %c0_27], %83 {strides = array<i32>} : memref<32x128xf32, #tpu.memory_space<vmem>>, vector<1x128xf32>,
    %c14_i32 = arith.constant 14 : i32
    %85 = arith.addi %0, %c14_i32 : i32
    %86 = arith.index_cast %85 : i32 to index
    %87 = memref.load %arg1[%86] : memref<64xi32, #tpu.memory_space<smem>>
    %88 = arith.index_cast %87 : i32 to index
    %c0_28 = arith.constant 0 : index
    %89 = vector.load %arg2[%88, %c0_28] : memref<256x128xf32, #tpu.memory_space<vmem>>, vector<1x128xf32>
    %c14 = arith.constant 14 : index
    %c0_29 = arith.constant 0 : index
    %90 = vector.load %arg3[%c14, %c0_29] : memref<32x128xf32, #tpu.memory_space<vmem>>, vector<1x128xf32>
    tpu.vector_store %arg3[%c14, %c0_29], %89 {strides = array<i32>} : memref<32x128xf32, #tpu.memory_space<vmem>>, vector<1x128xf32>,
    %c15_i32 = arith.constant 15 : i32
    %91 = arith.addi %0, %c15_i32 : i32
    %92 = arith.index_cast %91 : i32 to index
    %93 = memref.load %arg1[%92] : memref<64xi32, #tpu.memory_space<smem>>
    %94 = arith.index_cast %93 : i32 to index
    %c0_30 = arith.constant 0 : index
    %95 = vector.load %arg2[%94, %c0_30] : memref<256x128xf32, #tpu.memory_space<vmem>>, vector<1x128xf32>
    %c15 = arith.constant 15 : index
    %c0_31 = arith.constant 0 : index
    %96 = vector.load %arg3[%c15, %c0_31] : memref<32x128xf32, #tpu.memory_space<vmem>>, vector<1x128xf32>
    tpu.vector_store %arg3[%c15, %c0_31], %95 {strides = array<i32>} : memref<32x128xf32, #tpu.memory_space<vmem>>, vector<1x128xf32>,
    %c16_i32 = arith.constant 16 : i32
    %97 = arith.addi %0, %c16_i32 : i32
    %98 = arith.index_cast %97 : i32 to index
    %99 = memref.load %arg1[%98] : memref<64xi32, #tpu.memory_space<smem>>
    %100 = arith.index_cast %99 : i32 to index
    %c0_32 = arith.constant 0 : index
    %101 = vector.load %arg2[%100, %c0_32] : memref<256x128xf32, #tpu.memory_space<vmem>>, vector<1x128xf32>
    %c16 = arith.constant 16 : index
    %c0_33 = arith.constant 0 : index
    %102 = vector.load %arg3[%c16, %c0_33] : memref<32x128xf32, #tpu.memory_space<vmem>>, vector<1x128xf32>
    tpu.vector_store %arg3[%c16, %c0_33], %101 {strides = array<i32>} : memref<32x128xf32, #tpu.memory_space<vmem>>, vector<1x128xf32>,
    %c17_i32 = arith.constant 17 : i32
    %103 = arith.addi %0, %c17_i32 : i32
    %104 = arith.index_cast %103 : i32 to index
    %105 = memref.load %arg1[%104] : memref<64xi32, #tpu.memory_space<smem>>
    %106 = arith.index_cast %105 : i32 to index
    %c0_34 = arith.constant 0 : index
    %107 = vector.load %arg2[%106, %c0_34] : memref<256x128xf32, #tpu.memory_space<vmem>>, vector<1x128xf32>
    %c17 = arith.constant 17 : index
    %c0_35 = arith.constant 0 : index
    %108 = vector.load %arg3[%c17, %c0_35] : memref<32x128xf32, #tpu.memory_space<vmem>>, vector<1x128xf32>
    tpu.vector_store %arg3[%c17, %c0_35], %107 {strides = array<i32>} : memref<32x128xf32, #tpu.memory_space<vmem>>, vector<1x128xf32>,
    %c18_i32 = arith.constant 18 : i32
    %109 = arith.addi %0, %c18_i32 : i32
    %110 = arith.index_cast %109 : i32 to index
    %111 = memref.load %arg1[%110] : memref<64xi32, #tpu.memory_space<smem>>
    %112 = arith.index_cast %111 : i32 to index
    %c0_36 = arith.constant 0 : index
    %113 = vector.load %arg2[%112, %c0_36] : memref<256x128xf32, #tpu.memory_space<vmem>>, vector<1x128xf32>
    %c18 = arith.constant 18 : index
    %c0_37 = arith.constant 0 : index
    %114 = vector.load %arg3[%c18, %c0_37] : memref<32x128xf32, #tpu.memory_space<vmem>>, vector<1x128xf32>
    tpu.vector_store %arg3[%c18, %c0_37], %113 {strides = array<i32>} : memref<32x128xf32, #tpu.memory_space<vmem>>, vector<1x128xf32>,
    %c19_i32 = arith.constant 19 : i32
    %115 = arith.addi %0, %c19_i32 : i32
    %116 = arith.index_cast %115 : i32 to index
    %117 = memref.load %arg1[%116] : memref<64xi32, #tpu.memory_space<smem>>
    %118 = arith.index_cast %117 : i32 to index
    %c0_38 = arith.constant 0 : index
    %119 = vector.load %arg2[%118, %c0_38] : memref<256x128xf32, #tpu.memory_space<vmem>>, vector<1x128xf32>
    %c19 = arith.constant 19 : index
    %c0_39 = arith.constant 0 : index
    %120 = vector.load %arg3[%c19, %c0_39] : memref<32x128xf32, #tpu.memory_space<vmem>>, vector<1x128xf32>
    tpu.vector_store %arg3[%c19, %c0_39], %119 {strides = array<i32>} : memref<32x128xf32, #tpu.memory_space<vmem>>, vector<1x128xf32>,
    %c20_i32 = arith.constant 20 : i32
    %121 = arith.addi %0, %c20_i32 : i32
    %122 = arith.index_cast %121 : i32 to index
    %123 = memref.load %arg1[%122] : memref<64xi32, #tpu.memory_space<smem>>
    %124 = arith.index_cast %123 : i32 to index
    %c0_40 = arith.constant 0 : index
    %125 = vector.load %arg2[%124, %c0_40] : memref<256x128xf32, #tpu.memory_space<vmem>>, vector<1x128xf32>
    %c20 = arith.constant 20 : index
    %c0_41 = arith.constant 0 : index
    %126 = vector.load %arg3[%c20, %c0_41] : memref<32x128xf32, #tpu.memory_space<vmem>>, vector<1x128xf32>
    tpu.vector_store %arg3[%c20, %c0_41], %125 {strides = array<i32>} : memref<32x128xf32, #tpu.memory_space<vmem>>, vector<1x128xf32>,
    %c21_i32 = arith.constant 21 : i32
    %127 = arith.addi %0, %c21_i32 : i32
    %128 = arith.index_cast %127 : i32 to index
    %129 = memref.load %arg1[%128] : memref<64xi32, #tpu.memory_space<smem>>
    %130 = arith.index_cast %129 : i32 to index
    %c0_42 = arith.constant 0 : index
    %131 = vector.load %arg2[%130, %c0_42] : memref<256x128xf32, #tpu.memory_space<vmem>>, vector<1x128xf32>
    %c21 = arith.constant 21 : index
    %c0_43 = arith.constant 0 : index
    %132 = vector.load %arg3[%c21, %c0_43] : memref<32x128xf32, #tpu.memory_space<vmem>>, vector<1x128xf32>
    tpu.vector_store %arg3[%c21, %c0_43], %131 {strides = array<i32>} : memref<32x128xf32, #tpu.memory_space<vmem>>, vector<1x128xf32>,
    %c22_i32 = arith.constant 22 : i32
    %133 = arith.addi %0, %c22_i32 : i32
    %134 = arith.index_cast %133 : i32 to index
    %135 = memref.load %arg1[%134] : memref<64xi32, #tpu.memory_space<smem>>
    %136 = arith.index_cast %135 : i32 to index
    %c0_44 = arith.constant 0 : index
    %137 = vector.load %arg2[%136, %c0_44] : memref<256x128xf32, #tpu.memory_space<vmem>>, vector<1x128xf32>
    %c22 = arith.constant 22 : index
    %c0_45 = arith.constant 0 : index
    %138 = vector.load %arg3[%c22, %c0_45] : memref<32x128xf32, #tpu.memory_space<vmem>>, vector<1x128xf32>
    tpu.vector_store %arg3[%c22, %c0_45], %137 {strides = array<i32>} : memref<32x128xf32, #tpu.memory_space<vmem>>, vector<1x128xf32>,
    %c23_i32 = arith.constant 23 : i32
    %139 = arith.addi %0, %c23_i32 : i32
    %140 = arith.index_cast %139 : i32 to index
    %141 = memref.load %arg1[%140] : memref<64xi32, #tpu.memory_space<smem>>
    %142 = arith.index_cast %141 : i32 to index
    %c0_46 = arith.constant 0 : index
    %143 = vector.load %arg2[%142, %c0_46] : memref<256x128xf32, #tpu.memory_space<vmem>>, vector<1x128xf32>
    %c23 = arith.constant 23 : index
    %c0_47 = arith.constant 0 : index
    %144 = vector.load %arg3[%c23, %c0_47] : memref<32x128xf32, #tpu.memory_space<vmem>>, vector<1x128xf32>
    tpu.vector_store %arg3[%c23, %c0_47], %143 {strides = array<i32>} : memref<32x128xf32, #tpu.memory_space<vmem>>, vector<1x128xf32>,
    %c24_i32 = arith.constant 24 : i32
    %145 = arith.addi %0, %c24_i32 : i32
    %146 = arith.index_cast %145 : i32 to index
    %147 = memref.load %arg1[%146] : memref<64xi32, #tpu.memory_space<smem>>
    %148 = arith.index_cast %147 : i32 to index
    %c0_48 = arith.constant 0 : index
    %149 = vector.load %arg2[%148, %c0_48] : memref<256x128xf32, #tpu.memory_space<vmem>>, vector<1x128xf32>
    %c24 = arith.constant 24 : index
    %c0_49 = arith.constant 0 : index
    %150 = vector.load %arg3[%c24, %c0_49] : memref<32x128xf32, #tpu.memory_space<vmem>>, vector<1x128xf32>
    tpu.vector_store %arg3[%c24, %c0_49], %149 {strides = array<i32>} : memref<32x128xf32, #tpu.memory_space<vmem>>, vector<1x128xf32>,
    %c25_i32 = arith.constant 25 : i32
    %151 = arith.addi %0, %c25_i32 : i32
    %152 = arith.index_cast %151 : i32 to index
    %153 = memref.load %arg1[%152] : memref<64xi32, #tpu.memory_space<smem>>
    %154 = arith.index_cast %153 : i32 to index
    %c0_50 = arith.constant 0 : index
    %155 = vector.load %arg2[%154, %c0_50] : memref<256x128xf32, #tpu.memory_space<vmem>>, vector<1x128xf32>
    %c25 = arith.constant 25 : index
    %c0_51 = arith.constant 0 : index
    %156 = vector.load %arg3[%c25, %c0_51] : memref<32x128xf32, #tpu.memory_space<vmem>>, vector<1x128xf32>
    tpu.vector_store %arg3[%c25, %c0_51], %155 {strides = array<i32>} : memref<32x128xf32, #tpu.memory_space<vmem>>, vector<1x128xf32>,
    %c26_i32 = arith.constant 26 : i32
    %157 = arith.addi %0, %c26_i32 : i32
    %158 = arith.index_cast %157 : i32 to index
    %159 = memref.load %arg1[%158] : memref<64xi32, #tpu.memory_space<smem>>
    %160 = arith.index_cast %159 : i32 to index
    %c0_52 = arith.constant 0 : index
    %161 = vector.load %arg2[%160, %c0_52] : memref<256x128xf32, #tpu.memory_space<vmem>>, vector<1x128xf32>
    %c26 = arith.constant 26 : index
    %c0_53 = arith.constant 0 : index
    %162 = vector.load %arg3[%c26, %c0_53] : memref<32x128xf32, #tpu.memory_space<vmem>>, vector<1x128xf32>
    tpu.vector_store %arg3[%c26, %c0_53], %161 {strides = array<i32>} : memref<32x128xf32, #tpu.memory_space<vmem>>, vector<1x128xf32>,
    %c27_i32 = arith.constant 27 : i32
    %163 = arith.addi %0, %c27_i32 : i32
    %164 = arith.index_cast %163 : i32 to index
    %165 = memref.load %arg1[%164] : memref<64xi32, #tpu.memory_space<smem>>
    %166 = arith.index_cast %165 : i32 to index
    %c0_54 = arith.constant 0 : index
    %167 = vector.load %arg2[%166, %c0_54] : memref<256x128xf32, #tpu.memory_space<vmem>>, vector<1x128xf32>
    %c27 = arith.constant 27 : index
    %c0_55 = arith.constant 0 : index
    %168 = vector.load %arg3[%c27, %c0_55] : memref<32x128xf32, #tpu.memory_space<vmem>>, vector<1x128xf32>
    tpu.vector_store %arg3[%c27, %c0_55], %167 {strides = array<i32>} : memref<32x128xf32, #tpu.memory_space<vmem>>, vector<1x128xf32>,
    %c28_i32 = arith.constant 28 : i32
    %169 = arith.addi %0, %c28_i32 : i32
    %170 = arith.index_cast %169 : i32 to index
    %171 = memref.load %arg1[%170] : memref<64xi32, #tpu.memory_space<smem>>
    %172 = arith.index_cast %171 : i32 to index
    %c0_56 = arith.constant 0 : index
    %173 = vector.load %arg2[%172, %c0_56] : memref<256x128xf32, #tpu.memory_space<vmem>>, vector<1x128xf32>
    %c28 = arith.constant 28 : index
    %c0_57 = arith.constant 0 : index
    %174 = vector.load %arg3[%c28, %c0_57] : memref<32x128xf32, #tpu.memory_space<vmem>>, vector<1x128xf32>
    tpu.vector_store %arg3[%c28, %c0_57], %173 {strides = array<i32>} : memref<32x128xf32, #tpu.memory_space<vmem>>, vector<1x128xf32>,
    %c29_i32 = arith.constant 29 : i32
    %175 = arith.addi %0, %c29_i32 : i32
    %176 = arith.index_cast %175 : i32 to index
    %177 = memref.load %arg1[%176] : memref<64xi32, #tpu.memory_space<smem>>
    %178 = arith.index_cast %177 : i32 to index
    %c0_58 = arith.constant 0 : index
    %179 = vector.load %arg2[%178, %c0_58] : memref<256x128xf32, #tpu.memory_space<vmem>>, vector<1x128xf32>
    %c29 = arith.constant 29 : index
    %c0_59 = arith.constant 0 : index
    %180 = vector.load %arg3[%c29, %c0_59] : memref<32x128xf32, #tpu.memory_space<vmem>>, vector<1x128xf32>
    tpu.vector_store %arg3[%c29, %c0_59], %179 {strides = array<i32>} : memref<32x128xf32, #tpu.memory_space<vmem>>, vector<1x128xf32>,
    %c30_i32 = arith.constant 30 : i32
    %181 = arith.addi %0, %c30_i32 : i32
    %182 = arith.index_cast %181 : i32 to index
    %183 = memref.load %arg1[%182] : memref<64xi32, #tpu.memory_space<smem>>
    %184 = arith.index_cast %183 : i32 to index
    %c0_60 = arith.constant 0 : index
    %185 = vector.load %arg2[%184, %c0_60] : memref<256x128xf32, #tpu.memory_space<vmem>>, vector<1x128xf32>
    %c30 = arith.constant 30 : index
    %c0_61 = arith.constant 0 : index
    %186 = vector.load %arg3[%c30, %c0_61] : memref<32x128xf32, #tpu.memory_space<vmem>>, vector<1x128xf32>
    tpu.vector_store %arg3[%c30, %c0_61], %185 {strides = array<i32>} : memref<32x128xf32, #tpu.memory_space<vmem>>, vector<1x128xf32>,
    %c31_i32 = arith.constant 31 : i32
    %187 = arith.addi %0, %c31_i32 : i32
    %188 = arith.index_cast %187 : i32 to index
    %189 = memref.load %arg1[%188] : memref<64xi32, #tpu.memory_space<smem>>
    %190 = arith.index_cast %189 : i32 to index
    %c0_62 = arith.constant 0 : index
    %191 = vector.load %arg2[%190, %c0_62] : memref<256x128xf32, #tpu.memory_space<vmem>>, vector<1x128xf32>
    %c31 = arith.constant 31 : index
    %c0_63 = arith.constant 0 : index
    %192 = vector.load %arg3[%c31, %c0_63] : memref<32x128xf32, #tpu.memory_space<vmem>>, vector<1x128xf32>
    tpu.vector_store %arg3[%c31, %c0_63], %191 {strides = array<i32>} : memref<32x128xf32, #tpu.memory_space<vmem>>, vector<1x128xf32>,
    return
  }
  func.func @transform_0(%arg0: i32, %arg1: memref<64xi32, #tpu.memory_space<smem>>) -> (i32, i32) {
    %c0_i32 = arith.constant 0 : i32
    %c0_i32_0 = arith.constant 0 : i32
    %c0_i32_1 = arith.constant 0 : i32
    return %c0_i32, %c0_i32_0 : i32, i32
  }
  func.func @transform_1(%arg0: i32, %arg1: memref<64xi32, #tpu.memory_space<smem>>) -> (i32, i32) {
    %c0_i32 = arith.constant 0 : i32
    %c0_i32_0 = arith.constant 0 : i32
    return %arg0, %c0_i32 : i32, i32
  }
}

</mosaic_0001>

<bundles_post_ra>
// kernel: tpu_custom_call.1
= control target key start
LH: loop header
LB: loop body
LE: loop exit
PB: predicated region body
PF: predicated region fallthrough
CT: control target
= control target key end

     0   :  { %s554_s9 = smov [#allocation3]   ;;  %s768_s0 = inlined_call_operand.hbm [shape: s32[64], index: 0, kind: input, shape index: {}]   ;;  %s769_s1 = inlined_call_operand.hbm [shape: f32[256,128], index: 1, kind: input, shape index: {}]   ;;  %s770_s2 = inlined_call_operand.hbm [shape: f32[64,128], index: 2, kind: output, shape index: {}]  }
   0x1   :  { %8 = dma.hbm_to_smem %s768_s0, 16, %s554_s9, [#allocation2] }
   0x2   :  { %528 = dma.done.wait [#allocation2], 16 }
   0x3   :  { %529 = vsyncadd [#allocation2], 4294967280 }
   0x4   :  { %10 = sfence }
   0x5   :  { %11 = vsyncpa [#allocation5], 0 }
   0x6   :  { %12 = vsyncpa [#allocation6], 0 }
   0x7   :  { %14 = vsyncpa [#allocation6 + $0x1], 0  ;;  %s579_s12 = smov 0   ;;  %s581_s13 = smov 0  }
   0x8   :  { %s583_s14 = smov 0   ;;  %s585_s15 = smov 0  }
   0x9 LB: > { %s600_s0 = sadd.s32 4294967295, %s552_s15   ;;  %s384_s16 = sadd.s32 4294967294, %s552_s15   ;;  %s552_s15 = sphi %s585_s15, %s778_s15   ;;  %s548_s14 = sphi %s583_s14, %s777_s14   ;;  %s544_s13 = sphi %s581_s13, %s776_s13   ;;  %s540_s12 = sphi %s579_s12, %s775_s12  }
   0xa   : > { %s604_s17 = sadd.s32 1, %s552_s15   ;;  %s48_s18 = sadd.s32 1, %s548_s14 }
   0xb   : > { %s45_s19 = ssub.s32 %s552_s15, %s604_s17  ;;  %p58_p0 = scmp.ne.s32.totalorder %s548_s14, %s544_s13 }
   0xc   : > { %p46_p1 = scmp.eq.s32.totalorder %s45_s19, 0  ;;  %p59_p2 = scmp.eq.s32.totalorder %s600_s0, 1 }
   0xd   : > { %p64_p3 = scmp.ne.s32.totalorder %s544_s13, %s540_s12  ;;  %p65_p4 = scmp.eq.s32.totalorder %s384_s16, 1 }
   0xe   : > { %s615_s20 = scalar_select %p46_p1, %s548_s14, %s48_s18  }
   0xf   : > { %p617_p5 = por %p59_p2, %p58_p0  ;;  %p621_p6 = por %p65_p4, %p64_p3 }
  0x10   : > { %p385_p7 = scmp.ge.s32.totalorder %s552_s15, 1  ;;  %p72_p8 = scmp.lt.s32.totalorder %s552_s15, 3 }
  0x11   : > { %s772_s22 = scalar_select %p621_p6, 1, 0 }
  0x12   : > { %p411_p9 = scmp.eq.s32.totalorder %s600_s0, 0  ;;  %p628_p10 = pnand %p385_p7, %p72_p8 }
  0x13   : > { %s555_s24 = smov [#allocation4]  }
  0x14   : > { %s84_s25 = sshll.u32 %s555_s24, 4  ;;  %p403_p11 = pneg %p628_p10  ;;  %s85_s25 = int_to_ptr.vmem [resolvable:$true] %s84_s25 }
  0x15   : > { %s471_s26 = scalar_lea.vmem %s85_s25, 4096  ;;  %p479_p3 = scmp.lt.s32.totalorder %s85_s25, %s85_s25 }
  0x16   : > { %p404_p12 = pnand %p411_p9, %p403_p11  ;;  %p472_p0 = scmp.ne.s32.totalorder %s85_s25, %s471_s26 }
  0x17   : > { %p480_p4 = scmp.lt.s32.totalorder %s471_s26, %s471_s26 }
  0x18   : > { %p462_p13 = pneg %p404_p12 }
  0x19   : > { %p481_p6 = por %p480_p4, %p479_p3 }
  0x1a   : > { %p474_p1 = pnand %p472_p0, %p462_p13 }
  0x1c   : > { %p475_p2 = pneg %p474_p1 }
  0x1e   : > { %p482_p7 = pnand %p481_p6, %p475_p2 }
  0x20   : > { %485 = shalt.err (!%p482_p7)
}
  0x21   : > { %s556_s27 = smov 128   ;;  %s557_s28 = smov 8  }
  0x22   : > { %406 = dma.hbm_to_vmem [thread:$0]  (!%p404_p12), %s769_s1, 4096, %s85_s25, [#allocation5], %s556_s27, %s556_s27, %s557_s28  }
  0x23   : > { %100 = sbr.rel (%p628_p10) target bundleno = 115 (0x73), region = 24 }
  0x28   : > { %531 = dma.done.wait (%p411_p9), [#allocation5], 4096  }
  0x29   : > { %533 = vsyncadd (%p411_p9), [#allocation5], 4294963200  ;;  %s112_s3 = sand.u32 1, %s544_s13   ;;  %s647_s4 = sshll.u32 %s600_s0, 5 }
  0x2a   : > { %s389_s5 = sshll.u32 %s112_s3, 5  ;;  %s117_s6 = sld [smem:[#allocation3 + %s647_s4]] }
  0x2b   : > { %s121_s7 = sadd.s32 1, %s647_s4  ;;  %s126_s8 = sadd.s32 2, %s647_s4 }
  0x2c   : > { %s122_s9 = sld [smem:[#allocation3 + %s121_s7]]  ;;  %s131_s10 = sadd.s32 3, %s647_s4 }
  0x2d   : > { %s127_s11 = sld [smem:[#allocation3 + %s126_s8]]  ;;  %s136_s16 = sadd.s32 4, %s647_s4 }
  0x2e   : > { %s132_s18 = sld [smem:[#allocation3 + %s131_s10]]  ;;  %s141_s19 = sadd.s32 5, %s647_s4 }
  0x2f   : > { %s137_s23 = sld [smem:[#allocation3 + %s136_s16]]  ;;  %s146_s26 = sadd.s32 6, %s647_s4 }
  0x30   : > { %s118_s24 = scalar_lea.vmem [#allocation4], %s117_s6  ;;  %s142_s25 = sld [smem:[#allocation3 + %s141_s19]] }
  0x31   : > { %v119_v0 = vld [vmem:[%s118_s24] sm:$0x1]  ;;  %s658_s27 = scalar_lea.vmem [#allocation7], %s389_s5  ;;  %s147_s28 = sld [smem:[#allocation3 + %s146_s26]] }
  0x32   : > { %120 = vst [vmem:[%s658_s27] sm:$0x1] %v119_v0  ;;  %s151_s29 = sadd.s32 7, %s647_s4  ;;  %s123_s7 = scalar_lea.vmem [#allocation4], %s122_s9 }
  0x33   : > { %s152_s30 = sld [smem:[#allocation3 + %s151_s29]]  ;;  %v124_v1 = vld [vmem:[%s123_s7] sm:$0x1]  ;;  %s156_s8 = sadd.s32 8, %s647_s4 }
  0x34   : > { %125 = vst [vmem:[%s658_s27 + $0x1] sm:$0x1] %v124_v1  ;;  %s128_s6 = scalar_lea.vmem [#allocation4], %s127_s11  ;;  %s157_s10 = sld [smem:[#allocation3 + %s156_s8]] }
  0x35   : > { %v129_v2 = vld [vmem:[%s128_s6] sm:$0x1]  ;;  %s133_s5 = scalar_lea.vmem [#allocation4], %s132_s18  ;;  %s161_s16 = sadd.s32 9, %s647_s4 }
  0x36   : > { %130 = vst [vmem:[%s658_s27 + $0x2] sm:$0x1] %v129_v2  ;;  %v134_v3 = vld [vmem:[%s133_s5] sm:$0x1]  ;;  %s138_s19 = scalar_lea.vmem [#allocation4], %s137_s23  ;;  %s162_s9 = sld [smem:[#allocation3 + %s161_s16]] }
  0x37   : > { %135 = vst [vmem:[%s658_s27 + $0x3] sm:$0x1] %v134_v3  ;;  %v139_v4 = vld [vmem:[%s138_s19] sm:$0x1]  ;;  %s143_s24 = scalar_lea.vmem [#allocation4], %s142_s25  ;;  %s166_s26 = sadd.s32 10, %s647_s4 }
  0x38   : > { %140 = vst [vmem:[%s658_s27 + $0x4] sm:$0x1] %v139_v4  ;;  %v144_v5 = vld [vmem:[%s143_s24] sm:$0x1]  ;;  %s148_s11 = scalar_lea.vmem [#allocation4], %s147_s28  ;;  %s167_s29 = sld [smem:[#allocation3 + %s166_s26]] }
  0x39   : > { %145 = vst [vmem:[%s658_s27 + $0x5] sm:$0x1] %v144_v5  ;;  %v149_v6 = vld [vmem:[%s148_s11] sm:$0x1]  ;;  %s153_s18 = scalar_lea.vmem [#allocation4], %s152_s30  ;;  %s171_s23 = sadd.s32 11, %s647_s4 }
  0x3a   : > { %150 = vst [vmem:[%s658_s27 + $0x6] sm:$0x1] %v149_v6  ;;  %v154_v7 = vld [vmem:[%s153_s18] sm:$0x1]  ;;  %s176_s7 = sadd.s32 12, %s647_s4  ;;  %s172_s8 = sld [smem:[#allocation3 + %s171_s23]] }
  0x3b   : > { %155 = vst [vmem:[%s658_s27 + $0x7] sm:$0x1] %v154_v7  ;;  %s158_s25 = scalar_lea.vmem [#allocation4], %s157_s10  ;;  %s177_s6 = sld [smem:[#allocation3 + %s176_s7]] }
  0x3c   : > { %v159_v8 = vld [vmem:[%s158_s25] sm:$0x1]  ;;  %s181_s5 = sadd.s32 13, %s647_s4  ;;  %s163_s16 = scalar_lea.vmem [#allocation4], %s162_s9 }
  0x3d   : > { %160 = vst [vmem:[%s658_s27 + $0x8] sm:$0x1] %v159_v8  ;;  %s182_s28 = sld [smem:[#allocation3 + %s181_s5]]  ;;  %v164_v9 = vld [vmem:[%s163_s16] sm:$0x1]  ;;  %s186_s19 = sadd.s32 14, %s647_s4 }
  0x3e   : > { %s191_s30 = sadd.s32 15, %s647_s4  ;;  %165 = vst [vmem:[%s658_s27 + $0x9] sm:$0x1] %v164_v9  ;;  %s187_s24 = sld [smem:[#allocation3 + %s186_s19]] }
  0x3f   : > { %s168_s26 = scalar_lea.vmem [#allocation4], %s167_s29  ;;  %s192_s10 = sld [smem:[#allocation3 + %s191_s30]] }
  0x40   : > { %v169_v10 = vld [vmem:[%s168_s26] sm:$0x1]  ;;  %s196_s11 = sadd.s32 16, %s647_s4  ;;  %s173_s23 = scalar_lea.vmem [#allocation4], %s172_s8 }
  0x41   : > { %170 = vst [vmem:[%s658_s27 + $0xa] sm:$0x1] %v169_v10  ;;  %s197_s18 = sld [smem:[#allocation3 + %s196_s11]]  ;;  %v174_v11 = vld [vmem:[%s173_s23] sm:$0x1]  ;;  %s201_s7 = sadd.s32 17, %s647_s4 }
  0x42   : > { %175 = vst [vmem:[%s658_s27 + $0xb] sm:$0x1] %v174_v11  ;;  %s178_s9 = scalar_lea.vmem [#allocation4], %s177_s6  ;;  %s202_s25 = sld [smem:[#allocation3 + %s201_s7]] }
  0x43   : > { %v179_v12 = vld [vmem:[%s178_s9] sm:$0x1]  ;;  %s183_s29 = scalar_lea.vmem [#allocation4], %s182_s28  ;;  %s206_s5 = sadd.s32 18, %s647_s4 }
  0x44   : > { %180 = vst [vmem:[%s658_s27 + $0xc] sm:$0x1] %v179_v12  ;;  %v184_v13 = vld [vmem:[%s183_s29] sm:$0x1]  ;;  %s211_s16 = sadd.s32 19, %s647_s4  ;;  %s207_s19 = sld [smem:[#allocation3 + %s206_s5]] }
  0x45   : > { %185 = vst [vmem:[%s658_s27 + $0xd] sm:$0x1] %v184_v13  ;;  %s188_s30 = scalar_lea.vmem [#allocation4], %s187_s24  ;;  %s212_s8 = sld [smem:[#allocation3 + %s211_s16]] }
  0x46   : > { %v189_v14 = vld [vmem:[%s188_s30] sm:$0x1]  ;;  %s193_s6 = scalar_lea.vmem [#allocation4], %s192_s10  ;;  %s216_s26 = sadd.s32 20, %s647_s4 }
  0x47   : > { %190 = vst [vmem:[%s658_s27 + $0xe] sm:$0x1] %v189_v14  ;;  %v194_v15 = vld [vmem:[%s193_s6] sm:$0x1]  ;;  %s198_s28 = scalar_lea.vmem [#allocation4], %s197_s18  ;;  %s217_s11 = sld [smem:[#allocation3 + %s216_s26]] }
  0x48   : > { %195 = vst [vmem:[%s658_s27 + $0xf] sm:$0x1] %v194_v15  ;;  %v199_v16 = vld [vmem:[%s198_s28] sm:$0x1]  ;;  %s221_s23 = sadd.s32 21, %s647_s4  ;;  %s203_s7 = scalar_lea.vmem [#allocation4], %s202_s25 }
  0x49   : > { %200 = vst [vmem:[%s658_s27 + $0x10] sm:$0x1] %v199_v16  ;;  %s222_s24 = sld [smem:[#allocation3 + %s221_s23]]  ;;  %v204_v17 = vld [vmem:[%s203_s7] sm:$0x1]  ;;  %s226_s9 = sadd.s32 22, %s647_s4 }
  0x4a   : > { %s231_s29 = sadd.s32 23, %s647_s4  ;;  %205 = vst [vmem:[%s658_s27 + $0x11] sm:$0x1] %v204_v17  ;;  %s227_s10 = sld [smem:[#allocation3 + %s226_s9]] }
  0x4b   : > { %s208_s5 = scalar_lea.vmem [#allocation4], %s207_s19  ;;  %s232_s18 = sld [smem:[#allocation3 + %s231_s29]] }
  0x4c   : > { %v209_v18 = vld [vmem:[%s208_s5] sm:$0x1]  ;;  %s213_s16 = scalar_lea.vmem [#allocation4], %s212_s8  ;;  %s236_s30 = sadd.s32 24, %s647_s4 }
  0x4d   : > { %210 = vst [vmem:[%s658_s27 + $0x12] sm:$0x1] %v209_v18  ;;  %v214_v19 = vld [vmem:[%s213_s16] sm:$0x1]  ;;  %s241_s6 = sadd.s32 25, %s647_s4  ;;  %s237_s25 = sld [smem:[#allocation3 + %s236_s30]] }
  0x4e   : > { %215 = vst [vmem:[%s658_s27 + $0x13] sm:$0x1] %v214_v19  ;;  %s218_s26 = scalar_lea.vmem [#allocation4], %s217_s11  ;;  %s242_s28 = sld [smem:[#allocation3 + %s241_s6]] }
  0x4f   : > { %v219_v20 = vld [vmem:[%s218_s26] sm:$0x1]  ;;  %s223_s19 = scalar_lea.vmem [#allocation4], %s222_s24  ;;  %s246_s23 = sadd.s32 26, %s647_s4 }
  0x50   : > { %220 = vst [vmem:[%s658_s27 + $0x14] sm:$0x1] %v219_v20  ;;  %v224_v21 = vld [vmem:[%s223_s19] sm:$0x1]  ;;  %s251_s7 = sadd.s32 27, %s647_s4  ;;  %s247_s8 = sld [smem:[#allocation3 + %s246_s23]] }
  0x51   : > { %225 = vst [vmem:[%s658_s27 + $0x15] sm:$0x1] %v224_v21  ;;  %s228_s9 = scalar_lea.vmem [#allocation4], %s227_s10  ;;  %s252_s29 = sld [smem:[#allocation3 + %s251_s7]] }
  0x52   : > { %v229_v22 = vld [vmem:[%s228_s9] sm:$0x1]  ;;  %s233_s11 = scalar_lea.vmem [#allocation4], %s232_s18  ;;  %s256_s5 = sadd.s32 28, %s647_s4 }
  0x53   : > { %230 = vst [vmem:[%s658_s27 + $0x16] sm:$0x1] %v229_v22  ;;  %v234_v23 = vld [vmem:[%s233_s11] sm:$0x1]  ;;  %s261_s16 = sadd.s32 29, %s647_s4  ;;  %s257_s24 = sld [smem:[#allocation3 + %s256_s5]] }
  0x54   : > { %235 = vst [vmem:[%s658_s27 + $0x17] sm:$0x1] %v234_v23  ;;  %s238_s30 = scalar_lea.vmem [#allocation4], %s237_s25  ;;  %s262_s6 = sld [smem:[#allocation3 + %s261_s16]] }
  0x55   : > { %v239_v24 = vld [vmem:[%s238_s30] sm:$0x1]  ;;  %s243_s10 = scalar_lea.vmem [#allocation4], %s242_s28  ;;  %s266_s26 = sadd.s32 30, %s647_s4 }
  0x56   : > { %240 = vst [vmem:[%s658_s27 + $0x18] sm:$0x1] %v239_v24  ;;  %v244_v25 = vld [vmem:[%s243_s10] sm:$0x1]  ;;  %s271_s19 = sadd.s32 31, %s647_s4  ;;  %s267_s18 = sld [smem:[#allocation3 + %s266_s26]] }
  0x57   : > { %245 = vst [vmem:[%s658_s27 + $0x19] sm:$0x1] %v244_v25  ;;  %s248_s23 = scalar_lea.vmem [#allocation4], %s247_s8  ;;  %s272_s7 = sld [smem:[#allocation3 + %s271_s19]] }
  0x58   : > { %v249_v26 = vld [vmem:[%s248_s23] sm:$0x1]  ;;  %s253_s25 = scalar_lea.vmem [#allocation4], %s252_s29  ;;  %s396_s9 = sshll.u32 %s600_s0, 9 }
  0x59   : > { %250 = vst [vmem:[%s658_s27 + $0x1a] sm:$0x1] %v249_v26  ;;  %v254_v27 = vld [vmem:[%s253_s25] sm:$0x1]  ;;  %s290_s11 = sshll.u32 %s658_s27, 4  ;;  %s258_s28 = scalar_lea.vmem [#allocation4], %s257_s24  ;;  %s721_s11 = int_to_ptr.vmem [resolvable:$true] %s290_s11 }
  0x5a   : > { %255 = vst [vmem:[%s658_s27 + $0x1b] sm:$0x1] %v254_v27  ;;  %v259_v28 = vld [vmem:[%s258_s28] sm:$0x1]  ;;  %s263_s4 = scalar_lea.vmem [#allocation4], %s262_s6  ;;  %s719_s16 = scalar_lea.hbm %s770_s2, %s396_s9 }
  0x5b   : > { %260 = vst [vmem:[%s658_s27 + $0x1c] sm:$0x1] %v259_v28  ;;  %v264_v29 = vld [vmem:[%s263_s4] sm:$0x1]  ;;  %s728_s24 = scalar_lea.sflag [#allocation6], %s112_s3  ;;  %s486_s30 = scalar_lea.vmem %s721_s11, 512 }
  0x5c   : > { %265 = vst [vmem:[%s658_s27 + $0x1d] sm:$0x1] %v264_v29  ;;  %s268_s0 = scalar_lea.vmem [#allocation4], %s267_s18  ;;  %p487_p6 = scmp.ne.s32.totalorder %s721_s11, %s486_s30 }
  0x5d   : > { %v269_v30 = vld [vmem:[%s268_s0] sm:$0x1]  ;;  %s273_s29 = scalar_lea.vmem [#allocation4], %s272_s7  ;;  %s558_s6 = smov [#allocation7]  }
  0x5e   : > { %270 = vst [vmem:[%s658_s27 + $0x1e] sm:$0x1] %v269_v30  ;;  %v274_v31 = vld [vmem:[%s273_s29] sm:$0x1]  ;;  %p488_p8 = pnand %p487_p6, %p617_p5  ;;  %s490_s10 = sshll.u32 %s558_s6, 4  ;;  %s491_s10 = int_to_ptr.vmem [resolvable:$false] %s490_s10 }
  0x5f   : > { %275 = vst [vmem:[%s658_s27 + $0x1f] sm:$0x1] %v274_v31  ;;  %s492_s26 = scalar_lea.vmem %s491_s10, 1024  ;;  %p493_p10 = scmp.lt.s32.totalorder %s721_s11, %s491_s10 }
  0x60   : > { %p489_p9 = pneg %p488_p8  ;;  %p494_p11 = scmp.lt.s32.totalorder %s492_s26, %s486_s30 }
  0x62   : > { %p495_p12 = por %p494_p11, %p493_p10 }
  0x64   : > { %p496_p13 = pnand %p495_p12, %p489_p9 }
  0x66   : > { %499 = shalt.err (!%p496_p13)
}
  0x67   : > { %s500_s3 = scalar_lea.hbm %s719_s16, 512  ;;  %s504_s18 = scalar_lea.hbm %s770_s2, 1024 }
  0x68   : > { %p501_p0 = scmp.ne.s32.totalorder %s719_s16, %s500_s3  ;;  %p505_p3 = scmp.lt.s32.totalorder %s719_s16, %s770_s2 }
  0x69   : > { %p506_p4 = scmp.lt.s32.totalorder %s504_s18, %s500_s3 }
  0x6a   : > { %p502_p1 = pnand %p501_p0, %p617_p5 }
  0x6b   : > { %p507_p7 = por %p506_p4, %p505_p3 }
  0x6c   : > { %p503_p2 = pneg %p502_p1 }
  0x6e   : > { %p508_p6 = pnand %p507_p7, %p503_p2 }
  0x70   : > { %511 = shalt.err (!%p508_p6)
}
  0x71   : > { %s559_s25 = smov 128   ;;  %s560_s9 = smov 8  }
  0x72   : > { %401 = dma.vmem_to_hbm [thread:$0]  (%p617_p5), %s721_s11, 512, %s719_s16, %s728_s24, %s559_s25, %s559_s25, %s560_s9  }
  0x73 PF: > { %p413_p8 = scmp.ge.s32.totalorder %s552_s15, 2  ;;  %s305_s28 = sand.u32 1, %s540_s12  }
  0x74   : > { %p774_p9 = scmp.ne.s32.totalorder %s772_s22, 0  ;;  %s306_s4 = scalar_lea.sflag [#allocation6], %s305_s28 }
  0x76   : > { %p408_p10 = pnand %p413_p8, %p774_p9 }
  0x78   : > { %p409_p11 = pneg %p408_p10 }
  0x7a   : > { %535 = dma.done.wait (%p409_p11), %s306_s4, 512  }
  0x7b   : > { %537 = vsyncadd (%p409_p11), %s306_s4, 4294966784  ;;  %p17_p12 = scmp.ge.s32.totalorder %s604_s17, 4   ;;  %s775_s12 = smov %s544_s13 }
  0x7c   : > { %s776_s13 = smov %s548_s14  ;;  %s777_s14 = smov %s615_s20 }
  0x7d   : > { %s778_s15 = smov %s604_s17  ;;  %19 = sbr.rel (!%p17_p12) target bundleno = 9 (0x9), region = 93 }
  0x82   :  { %311 = vsyncpa [#allocation5], 1 }
  0x83   :  { %313 = vsyncpa [#allocation5 + $0x1], 1 }
  0x84   :  { %314 = vsyncpa [#allocation6], 1 }
  0x85   :  { %316 = vsyncpa [#allocation6 + $0x1], 1 }

</bundles_post_ra>
